<compile_context>
chip_gen: v6e
topology: v6e:2x2x1
jax: 0.10.0
libtpu: 0.0.40
codegen_flags: <defaults>
</compile_context>

<pallas_src>
import math
from functools import partial

import jax
import jax.numpy as jnp
from jax.experimental import pallas as pl
from jax.experimental.pallas import tpu as pltpu

_BASE_LANES = 128


def _lane_tile(x, reps):
    """Tile x (rows, w) -> (rows, reps*w) along lanes via doubling concats.

    On the hot path w is a multiple of 128, so every concat is lane-aligned.
    Piece order does not matter: every piece is a whole number of periods of x,
    so the result is lane-periodic with period w regardless of ordering.
    """
    if reps <= 1:
        return x
    pieces = []
    cur = x
    r = reps
    while r:
        if r & 1:
            pieces.append(cur)
        r >>= 1
        if r:
            cur = jnp.concatenate([cur, cur], axis=-1)
    if len(pieces) == 1:
        return pieces[0]
    return jnp.concatenate(pieces, axis=-1)


def _lin_rows(n, tq):
    """lin(i) = linspace(-1, 1, n)[i] for the rows of this grid block, (tq, 1) f32."""
    i0 = pl.program_id(0) * tq
    denom = float(max(n - 1, 1))
    row = jax.lax.broadcasted_iota(jnp.int32, (tq, 1), 0) + i0
    return -1.0 + (2.0 / denom) * row.astype(jnp.float32)


def _axial_rope_sep_kernel(ax_ref, mx_ref, sy_ref, cy_ref, sin_ref, cos_ref,
                           *, n, tq, reps):
    """Separable-angle kernel.

    ax_ref: (1, 128) f32  -- pi*scale pattern, lane-periodic with period dim.
    mx_ref: (1, M) f32    -- 1.0 on x-half columns, 0.0 on y-half columns.
    sy_ref/cy_ref: (1, M) f32 -- y-half sin/cos (zeroed on x-half columns).
    sin_ref/cos_ref: (tq, M) output tiles; row r = axial coord i, col = j*dim+c.
    """
    lin_i = _lin_rows(n, tq)                 # (tq, 1)
    ang_x = lin_i * ax_ref[...]              # (tq, 128) x-half angles (VPU)
    s_x = jnp.sin(ang_x)                     # transcendentals on (tq, 128) only
    c_x = jnp.cos(ang_x)
    s_full = _lane_tile(s_x, reps)           # (tq, M) lane-aligned tiling
    c_full = _lane_tile(c_x, reps)
    m = mx_ref[...]
    sin_ref[...] = (s_full * m + sy_ref[...]).astype(sin_ref.dtype)
    cos_ref[...] = (c_full * m + cy_ref[...]).astype(cos_ref.dtype)


def _axial_rope_full_kernel(a_ref, b_ref, sin_ref, cos_ref, *, n, tq):
    """Fallback: direct sin/cos of the full (tq, n*dim) angle tile."""
    lin_i = _lin_rows(n, tq)
    ang = lin_i * a_ref[...] + b_ref[...]
    sin_ref[...] = jnp.sin(ang).astype(sin_ref.dtype)
    cos_ref[...] = jnp.cos(ang).astype(cos_ref.dtype)


def _num_tensorcores():
    """Best-effort TensorCores-per-chip detection (v7x has 2, v5e/v6e have 1)."""
    try:
        kind = jax.devices()[0].device_kind.lower()
    except Exception:
        return 1
    return 2 if "7" in kind else 1


class AxialRotaryEmbedding:
    def __init__(self, dim, max_freq=10):
        assert dim % 4 == 0
        self.dim = dim
        # torch.logspace(0., log(max_freq/2)/log(2), dim//4, base=2)
        self.scales = jnp.logspace(
            0.0, math.log(max_freq / 2) / math.log(2), dim // 4,
            base=2.0, dtype=jnp.float32)

    def __call__(self, x):
        dim = self.dim
        quarter = dim // 4
        seq_len = x.shape[-2]
        n = int(math.isqrt(seq_len))
        assert n * n == seq_len, "AxialRotaryEmbedding: seq length must be a perfect square"

        M = n * dim                                   # lane-dense last dim of the slab
        out_dtype = x.dtype
        itemsize = jnp.dtype(out_dtype).itemsize

        # ---- host-side prep (tiny, O(n*dim)) ------------------------------------
        inner = jnp.arange(dim) // 2                  # undo the '(d j)', j=2 duplication
        scale_pi = self.scales[inner % quarter] * math.pi           # (dim,)
        is_x = inner < quarter                        # first half of dim uses the i coord
        lin = jnp.linspace(-1.0, 1.0, n, dtype=jnp.float32)         # (n,)

        # ---- row-block size (no padded rows; Pallas masks a partial last block) --
        rows_budget = max(8, (2 << 20) // max(1, 4 * M))  # ~2 MiB f32 per output block
        if n <= rows_budget:
            tq = n                                    # whole slab in one block
        else:
            tq = max(8, (rows_budget // 8) * 8)
        # Only split a single block across cores on chips with 2 TensorCores (v7x).
        if _num_tensorcores() > 1 and tq >= n and n >= 16:
            tq = max(8, ((n // 2 + 7) // 8) * 8)
        num_blocks = pl.cdiv(n, tq)

        out_sd = jax.ShapeDtypeStruct((n, M), out_dtype)
        out_specs = (pl.BlockSpec((tq, M), lambda i: (i, 0)),
                     pl.BlockSpec((tq, M), lambda i: (i, 0)))

        separable = (dim <= _BASE_LANES and _BASE_LANES % dim == 0
                     and M % _BASE_LANES == 0)

        if separable:
            reps = M // _BASE_LANES
            # x-half angle coefficients, lane-periodic with period `dim`, width 128.
            ax = jnp.tile(scale_pi, _BASE_LANES // dim).reshape(1, _BASE_LANES)
            ax = ax.astype(jnp.float32)
            # Resident (1, M) vectors: x-half mask and precomputed y-half sin/cos.
            mask_col = jnp.where(is_x, 1.0, 0.0).astype(jnp.float32)       # (dim,)
            mx = jnp.tile(mask_col, n).reshape(1, M)
            ang_y = lin[:, None] * scale_pi[None, :]                       # (n, dim)
            sy = jnp.where(is_x[None, :], 0.0,
                           jnp.sin(ang_y)).reshape(1, M).astype(jnp.float32)
            cy = jnp.where(is_x[None, :], 0.0,
                           jnp.cos(ang_y)).reshape(1, M).astype(jnp.float32)

            kern = partial(_axial_rope_sep_kernel, n=n, tq=tq, reps=reps)
            in_arrays = (ax, mx, sy, cy)
            in_specs = [
                pl.BlockSpec((1, _BASE_LANES), lambda i: (0, 0)),
                pl.BlockSpec((1, M), lambda i: (0, 0)),
                pl.BlockSpec((1, M), lambda i: (0, 0)),
                pl.BlockSpec((1, M), lambda i: (0, 0)),
            ]
            cost = pl.CostEstimate(
                flops=4 * n * M + 2 * n * _BASE_LANES,
                transcendentals=2 * n * _BASE_LANES,
                bytes_accessed=2 * n * M * itemsize + (3 * M + _BASE_LANES) * 4,
            )
        else:
            # TODO(synk): when M % 128 != 0 the stores on this path are lane-masked;
            # could pad the slab's last dim to a multiple of 128 if this path matters.
            ax_coef = jnp.where(is_x, scale_pi, 0.0)
            ay_coef = jnp.where(is_x, 0.0, scale_pi)
            a_coef = jnp.tile(ax_coef, n).reshape(1, M).astype(jnp.float32)
            b_ang = (lin[:, None] * ay_coef[None, :]).reshape(1, M).astype(jnp.float32)

            kern = partial(_axial_rope_full_kernel, n=n, tq=tq)
            in_arrays = (a_coef, b_ang)
            in_specs = [
                pl.BlockSpec((1, M), lambda i: (0, 0)),
                pl.BlockSpec((1, M), lambda i: (0, 0)),
            ]
            cost = pl.CostEstimate(
                flops=3 * n * M,
                transcendentals=2 * n * M,
                bytes_accessed=2 * n * M * itemsize + 2 * M * 4,
            )

        sin_slab, cos_slab = pl.pallas_call(
            kern,
            grid=(num_blocks,),
            in_specs=in_specs,
            out_specs=out_specs,
            out_shape=(out_sd, out_sd),
            compiler_params=pltpu.CompilerParams(
                dimension_semantics=("parallel",),
                vmem_limit_bytes=32 * 1024 * 1024,
            ),
            cost_estimate=cost,
        )(*in_arrays)

        # (n, n*dim) -> (1, n*n, dim); row-major, layout plumbing only (free).
        sin = sin_slab.reshape(1, n * n, dim)
        cos = cos_slab.reshape(1, n * n, dim)
        return sin, cos


def _reference(dim, max_freq, x):
    """Pure-JAX transcription of the PyTorch forward, for verification."""
    n = int(math.isqrt(x.shape[-2]))
    scales = jnp.logspace(0.0, math.log(max_freq / 2) / math.log(2), dim // 4,
                          base=2.0, dtype=jnp.float32)
    seq = jnp.linspace(-1.0, 1.0, n)[:, None]                 # (n, 1)
    seq = seq * scales[None, :] * math.pi                     # (n, dim//4)
    x_sinu = jnp.broadcast_to(seq[:, None, :], (n, n, dim // 4))
    y_sinu = jnp.broadcast_to(seq[None, :, :], (n, n, dim // 4))
    sin = jnp.concatenate([jnp.sin(x_sinu), jnp.sin(y_sinu)], axis=-1)
    cos = jnp.concatenate([jnp.cos(x_sinu), jnp.cos(y_sinu)], axis=-1)
    sin = sin.reshape(n * n, dim // 2)
    cos = cos.reshape(n * n, dim // 2)
    sin = jnp.repeat(sin, 2, axis=-1)[None].astype(x.dtype)   # '() n (d j)', j=2
    cos = jnp.repeat(cos, 2, axis=-1)[None].astype(x.dtype)
    return sin, cos


if __name__ == "__main__":
    key = jax.random.PRNGKey(0)

    # Case 1: dim=32, seq=64 (n=8), batch=2.
    dim = 32
    x = jax.random.normal(key, (2, 64, dim), dtype=jnp.float32)
    mod = AxialRotaryEmbedding(dim, max_freq=10)
    sin, cos = jax.block_until_ready(mod(x))
    sin_ref, cos_ref = _reference(dim, 10, x)
    assert sin.shape == (1, 64, dim) and cos.shape == (1, 64, dim)
    assert sin.dtype == x.dtype and cos.dtype == x.dtype
    assert jnp.allclose(sin, sin_ref, atol=3e-5, rtol=1e-5)
    assert jnp.allclose(cos, cos_ref, atol=3e-5, rtol=1e-5)

    # Case 2: dim=64, seq=1024 (n=32) — exercises the lane-tiling path (reps=16).
    dim2 = 64
    x2 = jax.random.normal(key, (1, 1024, dim2), dtype=jnp.float32)
    mod2 = AxialRotaryEmbedding(dim2, max_freq=10)
    sin2, cos2 = jax.block_until_ready(mod2(x2))
    sin2_ref, cos2_ref = _reference(dim2, 10, x2)
    assert sin2.shape == (1, 1024, dim2) and cos2.shape == (1, 1024, dim2)
    assert jnp.allclose(sin2, sin2_ref, atol=3e-5, rtol=1e-5)
    assert jnp.allclose(cos2, cos2_ref, atol=3e-5, rtol=1e-5)

    print("KERNEL_OK")
</pallas_src>

<mosaic_0001>
module attributes {stable_mosaic.version = 11 : i64} {
  func.func @_axial_rope_sep_kernel(%arg0: i32, %arg1: memref<1x128xf32, #tpu.memory_space<vmem>>, %arg2: memref<1x256xf32, #tpu.memory_space<vmem>>, %arg3: memref<1x256xf32, #tpu.memory_space<vmem>>, %arg4: memref<1x256xf32, #tpu.memory_space<vmem>>, %arg5: memref<8x256xf32, #tpu.memory_space<vmem>>, %arg6: memref<8x256xf32, #tpu.memory_space<vmem>>) attributes {dimension_semantics = [#tpu.dimension_semantics<parallel>], iteration_bounds = array<i64: 1>, scalar_prefetch = 0 : i64, scratch_operands = 0 : i64, tpu.core_type = #tpu.core_type<tc>, window_params = [{pipeline_mode = #tpu.pipeline_mode<synchronous>, transform_indices = @transform_0, window_bounds = array<i64: 1, 128>}, {pipeline_mode = #tpu.pipeline_mode<synchronous>, transform_indices = @transform_1, window_bounds = array<i64: 1, 256>}, {pipeline_mode = #tpu.pipeline_mode<synchronous>, transform_indices = @transform_2, window_bounds = array<i64: 1, 256>}, {pipeline_mode = #tpu.pipeline_mode<synchronous>, transform_indices = @transform_3, window_bounds = array<i64: 1, 256>}, {transform_indices = @transform_4, window_bounds = array<i64: 8, 256>}, {transform_indices = @transform_5, window_bounds = array<i64: 8, 256>}]} {
    %c8_i32 = arith.constant 8 : i32
    %0 = arith.muli %arg0, %c8_i32 : i32
    %1 = tpu.iota {dimensions = array<i32: 0>} : vector<8x1xi32>
    %2 = vector.broadcast %0 : i32 to vector<8x1xi32>
    %3 = arith.addi %1, %2 : vector<8x1xi32>
    %4 = arith.sitofp %3 : vector<8x1xi32> to vector<8x1xf32>
    %cst = arith.constant 0.285714298 : f32
    %5 = vector.broadcast %cst : f32 to vector<8x1xf32>
    %6 = arith.mulf %5, %4 : vector<8x1xf32>
    %cst_0 = arith.constant -1.000000e+00 : f32
    %7 = vector.broadcast %cst_0 : f32 to vector<8x1xf32>
    %8 = arith.addf %7, %6 : vector<8x1xf32>
    %c0 = arith.constant 0 : index
    %c0_1 = arith.constant 0 : index
    %9 = vector.load %arg1[%c0, %c0_1] : memref<1x128xf32, #tpu.memory_space<vmem>>, vector<1x128xf32>
    %10 = vector.broadcast %8 : vector<8x1xf32> to vector<8x128xf32>
    %11 = vector.broadcast %9 : vector<1x128xf32> to vector<8x128xf32>
    %12 = arith.mulf %10, %11 : vector<8x128xf32>
    %13 = math.sin %12 : vector<8x128xf32>
    %14 = math.cos %12 : vector<8x128xf32>
    %15 = tpu.concatenate %13, %13 in 1 : vector<8x128xf32>, vector<8x128xf32> -> vector<8x256xf32>
    %16 = tpu.concatenate %14, %14 in 1 : vector<8x128xf32>, vector<8x128xf32> -> vector<8x256xf32>
    %c0_2 = arith.constant 0 : index
    %c0_3 = arith.constant 0 : index
    %17 = vector.load %arg2[%c0_2, %c0_3] : memref<1x256xf32, #tpu.memory_space<vmem>>, vector<1x256xf32>
    %18 = vector.broadcast %17 : vector<1x256xf32> to vector<8x256xf32>
    %19 = arith.mulf %15, %18 : vector<8x256xf32>
    %c0_4 = arith.constant 0 : index
    %c0_5 = arith.constant 0 : index
    %20 = vector.load %arg3[%c0_4, %c0_5] : memref<1x256xf32, #tpu.memory_space<vmem>>, vector<1x256xf32>
    %21 = vector.broadcast %20 : vector<1x256xf32> to vector<8x256xf32>
    %22 = arith.addf %19, %21 : vector<8x256xf32>
    %c0_6 = arith.constant 0 : index
    %c0_7 = arith.constant 0 : index
    %23 = vector.load %arg5[%c0_6, %c0_7] : memref<8x256xf32, #tpu.memory_space<vmem>>, vector<8x256xf32>
    tpu.vector_store %arg5[%c0_6, %c0_7], %22 {strides = array<i32>} : memref<8x256xf32, #tpu.memory_space<vmem>>, vector<8x256xf32>,
    %24 = vector.broadcast %17 : vector<1x256xf32> to vector<8x256xf32>
    %25 = arith.mulf %16, %24 : vector<8x256xf32>
    %c0_8 = arith.constant 0 : index
    %c0_9 = arith.constant 0 : index
    %26 = vector.load %arg4[%c0_8, %c0_9] : memref<1x256xf32, #tpu.memory_space<vmem>>, vector<1x256xf32>
    %27 = vector.broadcast %26 : vector<1x256xf32> to vector<8x256xf32>
    %28 = arith.addf %25, %27 : vector<8x256xf32>
    %c0_10 = arith.constant 0 : index
    %c0_11 = arith.constant 0 : index
    %29 = vector.load %arg6[%c0_10, %c0_11] : memref<8x256xf32, #tpu.memory_space<vmem>>, vector<8x256xf32>
    tpu.vector_store %arg6[%c0_10, %c0_11], %28 {strides = array<i32>} : memref<8x256xf32, #tpu.memory_space<vmem>>, vector<8x256xf32>,
    return
  }
  func.func @transform_0(%arg0: i32) -> (i32, i32) {
    %c0_i32 = arith.constant 0 : i32
    %c0_i32_0 = arith.constant 0 : i32
    %c0_i32_1 = arith.constant 0 : i32
    return %c0_i32, %c0_i32_0 : i32, i32
  }
  func.func @transform_1(%arg0: i32) -> (i32, i32) {
    %c0_i32 = arith.constant 0 : i32
    %c0_i32_0 = arith.constant 0 : i32
    %c0_i32_1 = arith.constant 0 : i32
    return %c0_i32, %c0_i32_0 : i32, i32
  }
  func.func @transform_2(%arg0: i32) -> (i32, i32) {
    %c0_i32 = arith.constant 0 : i32
    %c0_i32_0 = arith.constant 0 : i32
    %c0_i32_1 = arith.constant 0 : i32
    return %c0_i32, %c0_i32_0 : i32, i32
  }
  func.func @transform_3(%arg0: i32) -> (i32, i32) {
    %c0_i32 = arith.constant 0 : i32
    %c0_i32_0 = arith.constant 0 : i32
    %c0_i32_1 = arith.constant 0 : i32
    return %c0_i32, %c0_i32_0 : i32, i32
  }
  func.func @transform_4(%arg0: i32) -> (i32, i32) {
    %c0_i32 = arith.constant 0 : i32
    %c0_i32_0 = arith.constant 0 : i32
    return %arg0, %c0_i32 : i32, i32
  }
  func.func @transform_5(%arg0: i32) -> (i32, i32) {
    %c0_i32 = arith.constant 0 : i32
    %c0_i32_0 = arith.constant 0 : i32
    return %arg0, %c0_i32 : i32, i32
  }
}

</mosaic_0001>

<bundles_post_ra>
// kernel: tpu_custom_call.1
= control target key start
LH: loop header
LB: loop body
LE: loop exit
PB: predicated region body
PF: predicated region fallthrough
CT: control target
= control target key end

     0   :  { %11 = vsyncpa [#allocation3], 0  ;;  %s545_s0 = inlined_call_operand.hbm [shape: f32[1,128], index: 0, kind: input, shape index: {}]   ;;  %s546_s1 = inlined_call_operand.hbm [shape: f32[1,256], index: 1, kind: input, shape index: {}]   ;;  %s547_s2 = inlined_call_operand.vmem [shape: f32[1,256], index: 2, kind: input, shape index: {}]   ;;  %s548_s3 = inlined_call_operand.vmem [shape: f32[1,256], index: 3, kind: input, shape index: {}]   ;;  %s549_s4 = inlined_call_operand.hbm [shape: f32[8,256], index: 4, kind: output, shape index: {0}]   ;;  %s550_s5 = inlined_call_operand.hbm [shape: f32[8,256], index: 5, kind: output, shape index: {1}]  }
   0x1   :  { %12 = vsyncpa [#allocation6], 0 }
   0x2   :  { %13 = vsyncpa [#allocation4], 0 }
   0x3   :  { %14 = vsyncpa [#allocation9], 0  ;;  %s461_s18 = smov [#allocation2]   ;;  %s462_s20 = smov [#allocation5]  }
   0x4   :  { %s21_s19 = sshll.u32 %s461_s18, 4  ;;  %s31_s21 = sshll.u32 %s462_s20, 4  ;;  %s22_s19 = int_to_ptr.vmem [resolvable:$true] %s21_s19  ;;  %s32_s21 = int_to_ptr.vmem [resolvable:$true] %s31_s21 }
   0x5   :  { %s381_s22 = scalar_lea.vmem %s22_s19, 16  ;;  %s385_s23 = scalar_lea.vmem %s22_s19, 32 }
   0x6   :  { %p382_p0 = scmp.ne.s32.totalorder %s22_s19, %s381_s22  ;;  %p386_p1 = scmp.lt.s32.totalorder %s22_s19, %s22_s19 }
   0x7   :  { %p387_p2 = scmp.lt.s32.totalorder %s385_s23, %s381_s22 }
   0x9   :  { %p388_p3 = por %p387_p2, %p386_p1 }
   0xb   :  { %p389_p4 = pnand %p388_p3, %p382_p0 }
   0xd   :  { %392 = shalt.err (!%p389_p4)
}
   0xe   :  { %24 = dma.hbm_to_vmem [thread:$0]  %s545_s0, 16, %s22_s19, [#allocation3]  }
   0xf   :  { %s401_s26 = scalar_lea.vmem %s32_s21, 32  ;;  %p406_p6 = scmp.lt.s32.totalorder %s32_s21, %s32_s21 }
  0x10   :  { %p402_p5 = scmp.ne.s32.totalorder %s32_s21, %s401_s26  ;;  %p407_p7 = scmp.lt.s32.totalorder %s401_s26, %s401_s26 }
  0x12   :  { %p408_p8 = por %p407_p7, %p406_p6 }
  0x14   :  { %p409_p9 = pnand %p408_p8, %p402_p5 }
  0x16   :  { %412 = shalt.err (!%p409_p9)
}
  0x17   :  { %34 = dma.hbm_to_vmem [thread:$0]  %s546_s1, 32, %s32_s21, [#allocation6]  }
  0x18   :  { %453 = dma.done.wait [#allocation3], 16  }
  0x19   :  { %454 = vsyncadd [#allocation3], 4294967280 }
  0x1a   :  { %455 = dma.done.wait [#allocation6], 32  }
  0x1b   :  { %456 = vsyncadd [#allocation6], 4294967264  ;;  %v46_v0 = vlaneseq  ;;  %v346_v4 = vld [vmem:[#allocation2] ss:$0 sm:$0xff]  ;;  %v463_v18 = vmov 683565275  }
  0x1c   :  { %v464_v20 = vmov 2475754826   ;;  %v465_v22 = vmov 2131351028   ;;  %v466_v24 = vmov 2102212464  }
  0x1d   :  { %v507_v1 = vshrl.u32 %v46_v0, 7  ;;  %v467_v26 = vmov 920167782   ;;  %v468_v33 = vmov 1326507024  }
  0x1f   :  { %v50_v2 = vcvt.s32.f32 %v507_v1 }
  0x21   :  { %v51_v3 = vmul.f32 0.2857143, %v50_v2 }
  0x23   :  { %v52_v5 = vadd.f32 -1.0, %v51_v3 }
  0x25   :  { %v510_v6 = vmul.f32 %v346_v4, %v52_v5 }
  0x27   :  { %v64_v7 = vand.u32 2139095040, %v510_v6  ;;  %v61_v9 = vand.u32 2147483647, %v510_v6  ;;  %vm63_vm7 = vcmp.lt.s32.totalorder %v510_v6, 0  ;;  %vm153_vm15 = vweird.f32 %v510_v6 }
  0x29   :  { %v65_v8 = vshrl.u32 %v64_v7, 23  ;;  %v68_v12 = vand.u32 8388607, %v61_v9  ;;  %vm62_vm8 = vcmp.le.f32.partialorder %v61_v9, 0.7853982 }
  0x2b   :  { %v347_v10 = vadd.s32 4294967169, %v65_v8  ;;  %v69_v15 = vor.u32 8388608, %v68_v12 }
  0x2d   :  { %v71_v11 = vadd.s32 1, %v347_v10  ;;  %v109_v35 = vshll.u32 %v69_v15, 8 }
  0x2f   :  { %vm72_vm0 = vcmp.gt.s32.totalorder %v71_v11, 0 }
  0x30   :  { %v73_v13 = vsel %vm72_vm0, %v71_v11, 0 }
  0x31   :  { %v75_v14 = vand.u32 31, %v73_v13  ;;  %v74_v16 = vshrl.u32 %v73_v13, 5 }
  0x33   :  { %v76_v17 = vsub.s32 32, %v75_v14  ;;  %v78_v19 = vshll.u32 %v463_v18, %v75_v14  ;;  %v81_v21 = vshll.u32 %v464_v20, %v75_v14  ;;  %v84_v23 = vshll.u32 %v465_v22, %v75_v14 }
  0x34   :  { %v87_v25 = vshll.u32 %v466_v24, %v75_v14  ;;  %v90_v27 = vshll.u32 %v467_v26, %v75_v14  ;;  %vm93_vm1 = vcmp.lt.s32.totalorder %v74_v16, 1  ;;  %vm96_vm2 = vcmp.lt.s32.totalorder %v74_v16, 4 }
  0x35   :  { %v77_v28 = vshrl.u32 %v463_v18, %v76_v17  ;;  %v79_v29 = vshrl.u32 %v464_v20, %v76_v17  ;;  %v82_v30 = vshrl.u32 %v465_v22, %v76_v17  ;;  %v85_v31 = vshrl.u32 %v466_v24, %v76_v17 }
  0x36   :  { %v88_v32 = vshrl.u32 %v467_v26, %v76_v17  ;;  %v91_v34 = vshrl.u32 %v468_v33, %v76_v17  ;;  %vm94_vm3 = vcmp.lt.s32.totalorder %v74_v16, 2  ;;  %vm95_vm4 = vcmp.lt.s32.totalorder %v74_v16, 3 }
  0x37   :  { %v80_v36 = vor.u32 %v79_v29, %v78_v19  ;;  %v83_v37 = vor.u32 %v82_v30, %v81_v21  ;;  %v86_v38 = vor.u32 %v85_v31, %v84_v23  ;;  %v272_v30 = vsub.s32 0, %v507_v1  ;;  %v268_v31 = vld [vmem:[#allocation5] sm:$0x3] }
  0x38   :  { %v89_v39 = vor.u32 %v88_v32, %v87_v25  ;;  %v92_v40 = vor.u32 %v91_v34, %v90_v27  ;;  %v276_v32 = vsub.s32 1, %v507_v1 }
  0x39   :  { %v97_v41 = vsel %vm93_vm1, %v77_v28, %v80_v36  ;;  %v98_v42 = vsel %vm96_vm2, %v86_v38, 2102212464  ;;  %v101_v43 = vsel %vm93_vm1, %v80_v36, %v83_v37  ;;  %v105_v44 = vsel %vm93_vm1, %v83_v37, %v86_v38 }
  0x3a   :  { %v99_v45 = vsel %vm95_vm4, %v83_v37, %v98_v42  ;;  %v102_v46 = vsel %vm96_vm2, %v89_v39, 920167782  ;;  %v106_v47 = vsel %vm96_vm2, %v92_v40, 1326507024  ;;  %v273_v37 = vrot.slane %v268_v31, %v272_v30 }
  0x3b   :  { %v103_v48 = vsel %vm95_vm4, %v86_v38, %v102_v46  ;;  %v107_v49 = vsel %vm95_vm4, %v89_v39, %v106_v47  ;;  %v100_v50 = vsel %vm94_vm3, %v97_v41, %v99_v45  ;;  %v300_v38 = vld [vmem:[%s548_s3] sm:$0x3]  ;;  %v277_v39 = vrot.slane %v268_v31, %v276_v32  ;;  %s470_s3 = smov [#allocation8]  }
  0x3c   :  { %v104_v51 = vsel %vm94_vm3, %v101_v43, %v103_v48  ;;  %v108_v52 = vsel %vm94_vm3, %v105_v44, %v107_v49  ;;  %v116_v57 = vmul.u32 %v109_v35, %v100_v50  ;;  %v305_v47 = vrot.slane %v300_v38, %v272_v30  ;;  %s332_s7 = sshll.u32 %s470_s3, 4  ;;  %s333_s7 = int_to_ptr.vmem [resolvable:$true] %s332_s7 }
  0x3d   :  { %v516_v53 = vmul.u32.u64.low %v109_v35, %v108_v52  ;;  %v517_v54 = vmul.u32.u64.high %v109_v35, %v108_v52, %v516_v53  ;;  %v519_v55 = vmul.u32.u64.low %v109_v35, %v104_v51  ;;  %v520_v56 = vmul.u32.u64.high %v109_v35, %v104_v51, %v519_v55  ;;  %v282_v35 = vld [vmem:[%s547_s2] sm:$0x3]  ;;  %s469_s2 = smov [#allocation7]  }
  0x3e   :  { %v287_v42 = vrot.slane %v282_v35, %v272_v30  ;;  %v291_v43 = vrot.slane %v282_v35, %v276_v32  ;;  %v309_v48 = vrot.slane %v300_v38, %v276_v32  ;;  %s322_s6 = sshll.u32 %s469_s2, 4  ;;  %s323_s6 = int_to_ptr.vmem [resolvable:$true] %s322_s6 }
  0x3f   :  { %vm118_vm5 = vc.u32 %v517_v54, %v519_v55  ;;  %v119_v58 = vadd.s32 1, %v520_v56  ;;  %v117_v7 = vadd.s32 %v519_v55, %v517_v54  ;;  %s413_s8 = scalar_lea.vmem %s323_s6, 256  ;;  %p418_p11 = scmp.lt.s32.totalorder %s323_s6, %s323_s6 }
  0x40   :  { %p414_p10 = scmp.ne.s32.totalorder %s323_s6, %s413_s8  ;;  %p419_p12 = scmp.lt.s32.totalorder %s413_s8, %s413_s8 }
  0x41   :  { %v120_v59 = vsel %vm118_vm5, %v119_v58, %v520_v56 }
  0x42   :  { %v121_v60 = vadd.s32 %v120_v59, %v116_v57  ;;  %p420_p13 = por %p419_p12, %p418_p11 }
  0x44   :  { %v122_v61 = vadd.s32 536870912, %v121_v60  ;;  %p421_p0 = pnand %p420_p13, %p414_p10 }
  0x46   :  { %v123_v62 = vshrl.u32 %v122_v61, 30 }
  0x48   :  { %v124_v63 = vshll.u32 %v123_v62, 30  ;;  %v147_v21 = vsub.s32 4, %v123_v62 }
  0x4a   :  { %v125_v0 = vsub.s32 %v121_v60, %v124_v63  ;;  %v148_v24 = vsel %vm63_vm7, %v147_v21, %v123_v62 }
  0x4b   :  { %v150_v26 = vsel %vm62_vm8, 0, %v148_v24 }
  0x4c   :  { %v127_v2 = vsub.s32 0, %v125_v0  ;;  %v154_v27 = vadd.s32 3, %v150_v26  ;;  %v258_v29 = vand.u32 3, %v150_v26 }
  0x4e   :  { %v348_v3 = vmin.u32 %v127_v2, %v125_v0  ;;  %v155_v28 = vand.u32 3, %v154_v27  ;;  %vm263_vm10 = vcmp.eq.s32.totalorder %v258_v29, 2  ;;  %vm260_vm12 = vcmp.eq.s32.totalorder %v258_v29, 0 }
  0x4f   :  { %vm259_vm14 = vcmp.lt.s32.totalorder %v258_v29, 2 }
  0x50   :  { %v129_v4 = vclz %v348_v3  ;;  %vm160_vm9 = vcmp.eq.s32.totalorder %v155_v28, 2  ;;  %vm157_vm11 = vcmp.eq.s32.totalorder %v155_v28, 0  ;;  %vm156_vm13 = vcmp.lt.s32.totalorder %v155_v28, 2 }
  0x52   :  { %v349_v5 = vadd.s32 4294967294, %v129_v4 }
  0x54   :  { %vm350_vm6 = vcmp.lt.s32.totalorder %v349_v5, 0 }
  0x55   :  { %v132_v8 = vsel %vm350_vm6, 0, %v349_v5 }
  0x56   :  { %v133_v10 = vsub.s32 32, %v132_v8  ;;  %v134_v11 = vshll.u32 %v125_v0, %v132_v8  ;;  %v137_v12 = vsub.s32 4294967266, %v132_v8 }
  0x58   :  { %v135_v13 = vshrl.u32 %v117_v7, %v133_v10  ;;  %v138_v14 = vadd.s32 127, %v137_v12 }
  0x5a   :  { %v136_v15 = vor.u32 %v135_v13, %v134_v11  ;;  %v139_v16 = vshll.u32 %v138_v14, 23 }
  0x5c   :  { %v140_v17 = vor.u32 4788187, %v139_v16  ;;  %v143_v18 = vcvt.s32.f32 %v136_v15 }
  0x5e   :  { %v141_v19 = vand.u32 2147483647, %v140_v17 }
  0x60   :  { %v144_v20 = vmul.f32 %v143_v18, %v141_v19 }
  0x62   :  { %v145_v22 = vxor.u32 2147483648, %v144_v20 }
  0x64   :  { %v146_v23 = vsel %vm63_vm7, %v145_v22, %v144_v20 }
  0x65   :  { %v149_v25 = vsel %vm62_vm8, %v510_v6, %v146_v23 }
  0x66   :  { %369 = vcosq.f32 %v149_v25 }
  0x67   :  { %371 = vsinq.f32 %v149_v25 }
  0x73   :  { %v370_v33 = vpop.eup %369 }
  0x74   :  { %v372_v9 = vpop.eup %371  ;;  %v161_v34 = vxor.u32 2147483648, %v370_v33 }
  0x75   :  { %v158_v36 = vxor.u32 2147483648, %v372_v9 }
  0x76   :  { %v162_v1 = vsel %vm160_vm9, %v161_v34, %v372_v9  ;;  %v265_v40 = vsel %vm263_vm10, %v161_v34, %v372_v9 }
  0x77   :  { %v159_v41 = vsel %vm157_vm11, %v370_v33, %v158_v36  ;;  %v262_v44 = vsel %vm260_vm12, %v370_v33, %v158_v36 }
  0x78   :  { %v163_v45 = vsel %vm156_vm13, %v159_v41, %v162_v1  ;;  %v266_v46 = vsel %vm259_vm14, %v262_v44, %v265_v40 }
  0x79   :  { %v164_v49 = vsel %vm153_vm15, nan, %v163_v45  ;;  %v267_v50 = vsel %vm153_vm15, nan, %v266_v46 }
  0x7a   :  { %v280_v51 = vmul.f32 %v273_v37, %v164_v49  ;;  %v281_v52 = vmul.f32 %v277_v39, %v164_v49  ;;  %v298_v53 = vmul.f32 %v273_v37, %v267_v50  ;;  %v299_v54 = vmul.f32 %v277_v39, %v267_v50 }
  0x7c   :  { %v294_v6 = vadd.f32 %v287_v42, %v280_v51  ;;  %v295_v55 = vadd.f32 %v291_v43, %v281_v52  ;;  %v312_v56 = vadd.f32 %v305_v47, %v298_v53  ;;  %v313_v57 = vadd.f32 %v309_v48, %v299_v54 }
  0x7e   :  { %296 = vst [vmem:[#allocation7] sm:$0xff] %v294_v6  ;;  %297 = vst [vmem:[#allocation7 + $0x8] sm:$0xff] %v295_v55 }
  0x7f   :  { %314 = vst [vmem:[#allocation8] sm:$0xff] %v312_v56  ;;  %315 = vst [vmem:[#allocation8 + $0x8] sm:$0xff] %v313_v57 }
  0x80   :  { %424 = shalt.err (!%p421_p0)
}
  0x81   :  { %325 = dma.vmem_to_hbm [thread:$0]  %s323_s6, 256, %s549_s4, [#allocation4]  }
  0x82   :  { %s433_s11 = scalar_lea.vmem %s333_s7, 256  ;;  %p438_p2 = scmp.lt.s32.totalorder %s333_s7, %s333_s7 }
  0x83   :  { %p434_p1 = scmp.ne.s32.totalorder %s333_s7, %s433_s11  ;;  %p439_p3 = scmp.lt.s32.totalorder %s433_s11, %s433_s11 }
  0x85   :  { %p440_p4 = por %p439_p3, %p438_p2 }
  0x87   :  { %p441_p5 = pnand %p440_p4, %p434_p1 }
  0x89   :  { %444 = shalt.err (!%p441_p5)
}
  0x8a   :  { %335 = dma.vmem_to_hbm [thread:$0]  %s333_s7, 256, %s550_s5, [#allocation9]  }
  0x8b   :  { %457 = dma.done.wait [#allocation4], 256  }
  0x8c   :  { %458 = vsyncadd [#allocation4], 4294967040 }
  0x8d   :  { %459 = dma.done.wait [#allocation9], 256  }
  0x8e   :  { %460 = vsyncadd [#allocation9], 4294967040 }
  0x8f   :  { %342 = vsyncpa [#allocation3], 1 }
  0x90   :  { %343 = vsyncpa [#allocation6], 1 }
  0x91   :  { %344 = vsyncpa [#allocation4], 1 }
  0x92   :  { %345 = vsyncpa [#allocation9], 1 }

</bundles_post_ra>
